<compile_context>
chip_gen: v7x
topology: tpu7x:2x2x1
jax: 0.10.0
libtpu: 0.0.40
codegen_flags: <defaults>
</compile_context>

<pallas_src>
import functools

import jax
import jax.numpy as jnp
from jax.experimental import pallas as pl
from jax.experimental.pallas import tpu as pltpu


# ---------------------------------------------------------------------------
# Kernel A: streaming 3x3 conv + ReLU + global-average-pool (pooled features)
# ---------------------------------------------------------------------------
def conv_pool_kernel(xt_ref, wc_ref, bc_ref, pooled_ref, acc_ref, *,
                     inv_pixels, tile_h, width, cin, grouped_pool):
    # xt_ref     : (1, TILE_H+2, W+2, C) bf16 halo'd input row-tile
    # wc_ref     : (9, C, FB) bf16 conv taps (tap k = dy*3+dx)
    # bc_ref     : (1, FB) f32 conv bias slice
    # pooled_ref : (1, 1, FB) f32 pooled-mean feature slice (written last tile)
    # acc_ref    : (8, FB) f32 VMEM scratch — partial pooled sums
    t = pl.program_id(2)

    @pl.when(t == 0)
    def _init():                                   # new (batch, F-slice) group
        acc_ref[...] = jnp.zeros_like(acc_ref)

    xb = xt_ref[0]                                 # (TILE_H+2, W+2, C) bf16
    rows = tile_h * width
    fb = wc_ref.shape[-1]

    # 3x3 conv as 9 accumulated shifted matmuls (bf16 MXU, f32 accumulation).
    acc = None
    for k in range(9):
        dy, dx = divmod(k, 3)
        win = xb[dy:dy + tile_h, dx:dx + width, :]            # (TILE_H, W, C)
        d = jnp.dot(win.reshape(rows, cin), wc_ref[k],
                    preferred_element_type=jnp.float32)       # (rows, FB)
        acc = d if acc is None else acc + d
    h = jnp.maximum(acc + bc_ref[...], 0.0)                   # (rows, FB) f32

    # Partial global-average-pool: VPU-only adds into the (8, FB) accumulator.
    if grouped_pool:
        acc_ref[...] += h.reshape(rows // 8, 8, fb).sum(axis=0)
    else:  # rows not a multiple of 8: single cross-sublane reduce per tile
        acc_ref[0:1, :] = acc_ref[0:1, :] + jnp.sum(h, axis=0, keepdims=True)

    @pl.when(t == pl.num_programs(2) - 1)
    def _epilogue():                               # collapse 8 -> 1 and scale once
        pooled_ref[0] = jnp.sum(acc_ref[...], axis=0, keepdims=True) * inv_pixels


# ---------------------------------------------------------------------------
# Kernel B: batched classifier head (exact Plot_Model replacement head)
# ---------------------------------------------------------------------------
def head_kernel(feat_ref, w1_ref, b1_ref, w2_ref, b2_ref, w3_ref, b3_ref,
                out_ref):
    z = jnp.dot(feat_ref[...].astype(jnp.bfloat16), w1_ref[...],
                preferred_element_type=jnp.float32)
    z = jnp.maximum(z + b1_ref[...], 0.0)          # Linear(F,128)+ReLU; Dropout(0.2)=id
    z = jnp.dot(z.astype(jnp.bfloat16), w2_ref[...],
                preferred_element_type=jnp.float32)
    z = jnp.maximum(z + b2_ref[...], 0.0)          # Linear(128,64)+ReLU; Dropout(0.3)=id
    o = jnp.dot(z.astype(jnp.bfloat16), w3_ref[...],
                preferred_element_type=jnp.float32)
    out_ref[...] = o + b3_ref[...]                 # (B, O_pad), lane-dense


# ---------------------------------------------------------------------------
# Host-side helpers
# ---------------------------------------------------------------------------
def _round_up(x, m):
    return ((x + m - 1) // m) * m


def _vmem_capacity_bytes():
    try:
        return int(pltpu.get_tpu_info().vmem_capacity_bytes)
    except Exception:                              # pragma: no cover
        return 64 * 1024 * 1024                    # conservative (v7x-sized)


def _plan_row_tile(H, W, C, fb, vmem_limit):
    """Largest row tile (divisor of H, <= 2048 conv rows) fitting the budget."""
    resident = 2 * (9 * C * fb * 2)                # conv-weight block, 2 bufs, bf16
    resident += 2 * (fb * 4)                       # bias block (f32)
    resident += 2 * (fb * 4)                       # pooled-output block (f32)
    resident += 8 * fb * 4                         # pooled-sum scratch
    budget = vmem_limit - resident - (8 << 20)     # explicit headroom
    best = None
    for th in range(1, H + 1):
        if H % th:
            continue
        rows = th * W
        if rows > 2048:                            # past ~85% of HBM roofline anyway
            continue
        stream = 2 * (th + 2) * (W + 2) * C * 2    # double-buffered bf16 input slab
        interm = 2 * rows * fb * 4                 # f32 conv accumulator + ReLU copy
        if stream + interm <= budget:
            best = th
    if best is None:
        raise ValueError("no conv row-tile fits in VMEM; reduce num_ftrs, "
                         "image width, or f_splits")
    return best


def _prepare_conv_input(x_nchw, tile_h):
    """NCHW -> padded NHWC bf16, restructured into halo'd row tiles.

    Output shape (B*NT, TILE_H+2, W+2, C); only ~1.1x of the input is written
    (2 halo rows per tile + 1-pixel spatial padding), vs 9x for im2col.
    """
    B, C, H, W = x_nchw.shape
    x = jnp.transpose(x_nchw, (0, 2, 3, 1)).astype(jnp.bfloat16)
    xp = jnp.pad(x, ((0, 0), (1, 1), (1, 1), (0, 0)))            # (B, H+2, W+2, C)
    nt = H // tile_h
    tiles = [xp[:, t * tile_h: t * tile_h + tile_h + 2] for t in range(nt)]
    xt = jnp.stack(tiles, axis=1)                                 # (B, NT, TH+2, W+2, C)
    return xt.reshape(B * nt, tile_h + 2, W + 2, C)


# ---------------------------------------------------------------------------
# Public wrapper (accepts PyTorch-style NCHW)
# ---------------------------------------------------------------------------
def plot_model_forward(x_nchw, params, *, tile_h=None, f_splits=1):
    B, C, H, W = x_nchw.shape
    F = params["conv_w"].shape[-1]
    O = params["fc3_w"].shape[-1]
    P = H * W

    assert F % f_splits == 0, "f_splits must divide num_ftrs"
    fb = F // f_splits
    assert f_splits == 1 or fb % 128 == 0, "per-split feature width must be 128-lane aligned"

    vmem_cap = _vmem_capacity_bytes()              # 64 MiB (v7x) / 128 MiB (v5e/v6e)
    vmem_limit = max(32 << 20, min(int(vmem_cap) - (8 << 20), 112 << 20))
    if tile_h is None:
        tile_h = _plan_row_tile(H, W, C, fb, vmem_limit)
    assert H % tile_h == 0, "tile_h must divide H"
    nt = H // tile_h
    rows = tile_h * W
    grouped_pool = (rows % 8 == 0)

    xt = _prepare_conv_input(x_nchw, tile_h)       # (B*NT, TH+2, W+2, C) bf16
    wc = params["conv_w"].astype(jnp.bfloat16)     # (9, C, F)
    bc = params["conv_b"].astype(jnp.float32)      # (1, F)

    kernel_a = functools.partial(
        conv_pool_kernel, inv_pixels=1.0 / P, tile_h=tile_h, width=W, cin=C,
        grouped_pool=grouped_pool)

    pooled = pl.pallas_call(
        kernel_a,
        out_shape=jax.ShapeDtypeStruct((B, 1, F), jnp.float32),
        grid_spec=pltpu.PrefetchScalarGridSpec(
            num_scalar_prefetch=0,
            # batch (parallel) x F-slice (parallel, v7x 2-TC) x row tiles (reduction)
            grid=(B, f_splits, nt),
            in_specs=[
                pl.BlockSpec((1, tile_h + 2, W + 2, C),
                             lambda b, jf, t: (b * nt + t, 0, 0, 0)),
                pl.BlockSpec((9, C, fb), lambda b, jf, t: (0, 0, jf)),
                pl.BlockSpec((1, fb), lambda b, jf, t: (0, jf)),
            ],
            out_specs=pl.BlockSpec((1, 1, fb), lambda b, jf, t: (b, 0, jf)),
            scratch_shapes=[pltpu.VMEM((8, fb), jnp.float32)],
        ),
        compiler_params=pltpu.CompilerParams(
            dimension_semantics=("parallel", "parallel", "arbitrary"),
            vmem_limit_bytes=vmem_limit),
    )(xt, wc, bc)

    feats = pooled.reshape(B, F)                   # lane-dense pooled means (f32)

    # ---- classifier head: one batched chain, O padded to 128 lanes ----------
    O_pad = _round_up(O, 128)
    w1 = params["fc1_w"].astype(jnp.bfloat16); b1 = params["fc1_b"].astype(jnp.float32)
    w2 = params["fc2_w"].astype(jnp.bfloat16); b2 = params["fc2_b"].astype(jnp.float32)
    w3 = params["fc3_w"].astype(jnp.bfloat16); b3 = params["fc3_b"].astype(jnp.float32)
    if O_pad != O:
        w3 = jnp.pad(w3, ((0, 0), (0, O_pad - O)))
        b3 = jnp.pad(b3, ((0, 0), (0, O_pad - O)))

    def fullspec(shape):
        return pl.BlockSpec(shape, lambda i: (0,) * len(shape))

    out_pad = pl.pallas_call(
        head_kernel,
        out_shape=jax.ShapeDtypeStruct((B, O_pad), jnp.float32),
        grid=(1,),
        in_specs=[fullspec((B, F)), fullspec(w1.shape), fullspec(b1.shape),
                  fullspec(w2.shape), fullspec(b2.shape),
                  fullspec(w3.shape), fullspec(b3.shape)],
        out_specs=fullspec((B, O_pad)),
    )(feats, w1, b1, w2, b2, w3, b3)
    return out_pad[:, :O]


# ---------------------------------------------------------------------------
# Deterministic parameter init + pure-JAX reference (same bf16/f32 recipe)
# ---------------------------------------------------------------------------
def make_params(key, cin, num_ftrs, output_shape):
    ks = jax.random.split(key, 8)
    s = 0.05
    return {
        "conv_w": s * jax.random.normal(ks[0], (9, cin, num_ftrs), jnp.float32),
        "conv_b": s * jax.random.normal(ks[1], (1, num_ftrs), jnp.float32),
        "fc1_w":  s * jax.random.normal(ks[2], (num_ftrs, 128), jnp.float32),
        "fc1_b":  s * jax.random.normal(ks[3], (1, 128), jnp.float32),
        "fc2_w":  s * jax.random.normal(ks[4], (128, 64), jnp.float32),
        "fc2_b":  s * jax.random.normal(ks[5], (1, 64), jnp.float32),
        "fc3_w":  s * jax.random.normal(ks[6], (64, output_shape), jnp.float32),
        "fc3_b":  s * jax.random.normal(ks[7], (1, output_shape), jnp.float32),
    }


def reference_forward(x_nchw, params):
    B, C, H, W = x_nchw.shape
    x = jnp.transpose(x_nchw, (0, 2, 3, 1)).astype(jnp.bfloat16)
    xp = jnp.pad(x, ((0, 0), (1, 1), (1, 1), (0, 0)))
    wc = params["conv_w"].astype(jnp.bfloat16)                 # (9, C, F)
    acc = None
    for k in range(9):
        dy, dx = divmod(k, 3)
        win = xp[:, dy:dy + H, dx:dx + W, :]                   # (B, H, W, C)
        d = jnp.einsum("bhwc,cf->bhwf", win, wc[k],
                       preferred_element_type=jnp.float32)
        acc = d if acc is None else acc + d
    h = jnp.maximum(acc + params["conv_b"].astype(jnp.float32), 0.0)
    feats = h.mean(axis=(1, 2)).astype(jnp.bfloat16)           # (B, F)
    z = jnp.dot(feats, params["fc1_w"].astype(jnp.bfloat16),
                preferred_element_type=jnp.float32)
    z = jnp.maximum(z + params["fc1_b"], 0.0)
    z = jnp.dot(z.astype(jnp.bfloat16), params["fc2_w"].astype(jnp.bfloat16),
                preferred_element_type=jnp.float32)
    z = jnp.maximum(z + params["fc2_b"], 0.0)
    o = jnp.dot(z.astype(jnp.bfloat16), params["fc3_w"].astype(jnp.bfloat16),
                preferred_element_type=jnp.float32)
    return o + params["fc3_b"]


if __name__ == "__main__":
    key = jax.random.PRNGKey(0)
    k_x, k_p = jax.random.split(key)

    B, C, H, W = 2, 4, 16, 16          # small NCHW image batch (PyTorch layout)
    NUM_FTRS = 256                     # MXU/lane-aligned stand-in for resnet50's 2048
    OUTPUT_SHAPE = 10

    x = jax.random.normal(k_x, (B, C, H, W), jnp.float32)
    params = make_params(k_p, C, NUM_FTRS, OUTPUT_SHAPE)

    # tile_h=4  -> 4 halo'd row tiles per image: exercises the accumulator
    #              init / accumulate / epilogue path (auto sizing would use 1).
    # f_splits=2 -> two 128-lane feature slices: exercises the v7x 2-TC
    #              parallel-F path (default 1 on single-TC v5e/v6e).
    out = plot_model_forward(x, params, tile_h=4, f_splits=2)
    out = jax.block_until_ready(out)

    ref = reference_forward(x, params)
    assert out.shape == (B, OUTPUT_SHAPE)
    max_err = float(jnp.max(jnp.abs(out - ref)))
    assert jnp.allclose(out, ref, rtol=2e-2, atol=2e-2), (
        f"mismatch vs reference (max abs err {max_err})")

    print("KERNEL_OK")
</pallas_src>

<mosaic_0001>
module attributes {stable_mosaic.version = 11 : i64} {
  func.func @conv_pool_kernel(%arg0: i32, %arg1: i32, %arg2: i32, %arg3: memref<1x6x18x4xbf16, #tpu.memory_space<vmem>>, %arg4: memref<9x4x128xbf16, #tpu.memory_space<vmem>>, %arg5: memref<1x128xf32, #tpu.memory_space<vmem>>, %arg6: memref<1x1x128xf32, #tpu.memory_space<vmem>>, %arg7: memref<8x128xf32, #tpu.memory_space<vmem>>) attributes {dimension_semantics = [#tpu.dimension_semantics<parallel>, #tpu.dimension_semantics<parallel>, #tpu.dimension_semantics<arbitrary>], iteration_bounds = array<i64: 2, 2, 4>, scalar_prefetch = 0 : i64, scratch_operands = 1 : i64, tpu.core_type = #tpu.core_type<tc>, window_params = [{transform_indices = @transform_0, window_bounds = array<i64: 1, 6, 18, 4>}, {transform_indices = @transform_1, window_bounds = array<i64: 9, 4, 128>}, {transform_indices = @transform_2, window_bounds = array<i64: 1, 128>}, {transform_indices = @transform_3, window_bounds = array<i64: 1, 1, 128>}]} {
    %c0_i32 = arith.constant 0 : i32
    %0 = arith.cmpi eq, %arg2, %c0_i32 : i32
    %1 = arith.extui %0 : i1 to i32
    %c0_i32_0 = arith.constant 0 : i32
    %2 = arith.cmpi ne, %1, %c0_i32_0 : i32
    scf.if %2 {
      %cst_40 = arith.constant 0.000000e+00 : f32
      %71 = vector.broadcast %cst_40 : f32 to vector<8x128xf32>
      %c0_41 = arith.constant 0 : index
      %c0_42 = arith.constant 0 : index
      %72 = vector.load %arg7[%c0_41, %c0_42] : memref<8x128xf32, #tpu.memory_space<vmem>>, vector<8x128xf32>
      tpu.vector_store %arg7[%c0_41, %c0_42], %71 {strides = array<i32>} : memref<8x128xf32, #tpu.memory_space<vmem>>, vector<8x128xf32>,
    } else {
    }
    %c0 = arith.constant 0 : index
    %c0_1 = arith.constant 0 : index
    %c0_2 = arith.constant 0 : index
    %c0_3 = arith.constant 0 : index
    %3 = vector.load %arg3[%c0, %c0_1, %c0_2, %c0_3] : memref<1x6x18x4xbf16, #tpu.memory_space<vmem>>, vector<1x6x18x4xbf16>
    %4 = vector.shape_cast %3 : vector<1x6x18x4xbf16> to vector<6x18x4xbf16>
    %5 = vector.extract_strided_slice %4 {offsets = [0, 0, 0], sizes = [4, 16, 4], strides = [1, 1, 1]} : vector<6x18x4xbf16> to vector<4x16x4xbf16>
    %6 = vector.shape_cast %5 : vector<4x16x4xbf16> to vector<64x4xbf16>
    %c0_4 = arith.constant 0 : index
    %c0_5 = arith.constant 0 : index
    %c0_6 = arith.constant 0 : index
    %7 = vector.load %arg4[%c0_4, %c0_5, %c0_6] : memref<9x4x128xbf16, #tpu.memory_space<vmem>>, vector<1x4x128xbf16>
    %8 = vector.shape_cast %7 : vector<1x4x128xbf16> to vector<4x128xbf16>
    %cst = arith.constant dense<0.000000e+00> : vector<64x128xf32>
    %9 = tpu.matmul %6, %8, %cst {dimension_numbers = #tpu.dot_dimension_numbers<[1], [0], [0], [1], [0, 0, 1, 1], [], []>} : vector<64x4xbf16>, vector<4x128xbf16>, vector<64x128xf32> -> vector<64x128xf32>
    %10 = vector.extract_strided_slice %4 {offsets = [0, 1, 0], sizes = [4, 16, 4], strides = [1, 1, 1]} : vector<6x18x4xbf16> to vector<4x16x4xbf16>
    %11 = vector.shape_cast %10 : vector<4x16x4xbf16> to vector<64x4xbf16>
    %c1 = arith.constant 1 : index
    %c0_7 = arith.constant 0 : index
    %c0_8 = arith.constant 0 : index
    %12 = vector.load %arg4[%c1, %c0_7, %c0_8] : memref<9x4x128xbf16, #tpu.memory_space<vmem>>, vector<1x4x128xbf16>
    %13 = vector.shape_cast %12 : vector<1x4x128xbf16> to vector<4x128xbf16>
    %cst_9 = arith.constant dense<0.000000e+00> : vector<64x128xf32>
    %14 = tpu.matmul %11, %13, %cst_9 {dimension_numbers = #tpu.dot_dimension_numbers<[1], [0], [0], [1], [0, 0, 1, 1], [], []>} : vector<64x4xbf16>, vector<4x128xbf16>, vector<64x128xf32> -> vector<64x128xf32>
    %15 = arith.addf %9, %14 : vector<64x128xf32>
    %16 = vector.extract_strided_slice %4 {offsets = [0, 2, 0], sizes = [4, 16, 4], strides = [1, 1, 1]} : vector<6x18x4xbf16> to vector<4x16x4xbf16>
    %17 = vector.shape_cast %16 : vector<4x16x4xbf16> to vector<64x4xbf16>
    %c2 = arith.constant 2 : index
    %c0_10 = arith.constant 0 : index
    %c0_11 = arith.constant 0 : index
    %18 = vector.load %arg4[%c2, %c0_10, %c0_11] : memref<9x4x128xbf16, #tpu.memory_space<vmem>>, vector<1x4x128xbf16>
    %19 = vector.shape_cast %18 : vector<1x4x128xbf16> to vector<4x128xbf16>
    %cst_12 = arith.constant dense<0.000000e+00> : vector<64x128xf32>
    %20 = tpu.matmul %17, %19, %cst_12 {dimension_numbers = #tpu.dot_dimension_numbers<[1], [0], [0], [1], [0, 0, 1, 1], [], []>} : vector<64x4xbf16>, vector<4x128xbf16>, vector<64x128xf32> -> vector<64x128xf32>
    %21 = arith.addf %15, %20 : vector<64x128xf32>
    %22 = vector.extract_strided_slice %4 {offsets = [1, 0, 0], sizes = [4, 16, 4], strides = [1, 1, 1]} : vector<6x18x4xbf16> to vector<4x16x4xbf16>
    %23 = vector.shape_cast %22 : vector<4x16x4xbf16> to vector<64x4xbf16>
    %c3 = arith.constant 3 : index
    %c0_13 = arith.constant 0 : index
    %c0_14 = arith.constant 0 : index
    %24 = vector.load %arg4[%c3, %c0_13, %c0_14] : memref<9x4x128xbf16, #tpu.memory_space<vmem>>, vector<1x4x128xbf16>
    %25 = vector.shape_cast %24 : vector<1x4x128xbf16> to vector<4x128xbf16>
    %cst_15 = arith.constant dense<0.000000e+00> : vector<64x128xf32>
    %26 = tpu.matmul %23, %25, %cst_15 {dimension_numbers = #tpu.dot_dimension_numbers<[1], [0], [0], [1], [0, 0, 1, 1], [], []>} : vector<64x4xbf16>, vector<4x128xbf16>, vector<64x128xf32> -> vector<64x128xf32>
    %27 = arith.addf %21, %26 : vector<64x128xf32>
    %28 = vector.extract_strided_slice %4 {offsets = [1, 1, 0], sizes = [4, 16, 4], strides = [1, 1, 1]} : vector<6x18x4xbf16> to vector<4x16x4xbf16>
    %29 = vector.shape_cast %28 : vector<4x16x4xbf16> to vector<64x4xbf16>
    %c4 = arith.constant 4 : index
    %c0_16 = arith.constant 0 : index
    %c0_17 = arith.constant 0 : index
    %30 = vector.load %arg4[%c4, %c0_16, %c0_17] : memref<9x4x128xbf16, #tpu.memory_space<vmem>>, vector<1x4x128xbf16>
    %31 = vector.shape_cast %30 : vector<1x4x128xbf16> to vector<4x128xbf16>
    %cst_18 = arith.constant dense<0.000000e+00> : vector<64x128xf32>
    %32 = tpu.matmul %29, %31, %cst_18 {dimension_numbers = #tpu.dot_dimension_numbers<[1], [0], [0], [1], [0, 0, 1, 1], [], []>} : vector<64x4xbf16>, vector<4x128xbf16>, vector<64x128xf32> -> vector<64x128xf32>
    %33 = arith.addf %27, %32 : vector<64x128xf32>
    %34 = vector.extract_strided_slice %4 {offsets = [1, 2, 0], sizes = [4, 16, 4], strides = [1, 1, 1]} : vector<6x18x4xbf16> to vector<4x16x4xbf16>
    %35 = vector.shape_cast %34 : vector<4x16x4xbf16> to vector<64x4xbf16>
    %c5 = arith.constant 5 : index
    %c0_19 = arith.constant 0 : index
    %c0_20 = arith.constant 0 : index
    %36 = vector.load %arg4[%c5, %c0_19, %c0_20] : memref<9x4x128xbf16, #tpu.memory_space<vmem>>, vector<1x4x128xbf16>
    %37 = vector.shape_cast %36 : vector<1x4x128xbf16> to vector<4x128xbf16>
    %cst_21 = arith.constant dense<0.000000e+00> : vector<64x128xf32>
    %38 = tpu.matmul %35, %37, %cst_21 {dimension_numbers = #tpu.dot_dimension_numbers<[1], [0], [0], [1], [0, 0, 1, 1], [], []>} : vector<64x4xbf16>, vector<4x128xbf16>, vector<64x128xf32> -> vector<64x128xf32>
    %39 = arith.addf %33, %38 : vector<64x128xf32>
    %40 = vector.extract_strided_slice %4 {offsets = [2, 0, 0], sizes = [4, 16, 4], strides = [1, 1, 1]} : vector<6x18x4xbf16> to vector<4x16x4xbf16>
    %41 = vector.shape_cast %40 : vector<4x16x4xbf16> to vector<64x4xbf16>
    %c6 = arith.constant 6 : index
    %c0_22 = arith.constant 0 : index
    %c0_23 = arith.constant 0 : index
    %42 = vector.load %arg4[%c6, %c0_22, %c0_23] : memref<9x4x128xbf16, #tpu.memory_space<vmem>>, vector<1x4x128xbf16>
    %43 = vector.shape_cast %42 : vector<1x4x128xbf16> to vector<4x128xbf16>
    %cst_24 = arith.constant dense<0.000000e+00> : vector<64x128xf32>
    %44 = tpu.matmul %41, %43, %cst_24 {dimension_numbers = #tpu.dot_dimension_numbers<[1], [0], [0], [1], [0, 0, 1, 1], [], []>} : vector<64x4xbf16>, vector<4x128xbf16>, vector<64x128xf32> -> vector<64x128xf32>
    %45 = arith.addf %39, %44 : vector<64x128xf32>
    %46 = vector.extract_strided_slice %4 {offsets = [2, 1, 0], sizes = [4, 16, 4], strides = [1, 1, 1]} : vector<6x18x4xbf16> to vector<4x16x4xbf16>
    %47 = vector.shape_cast %46 : vector<4x16x4xbf16> to vector<64x4xbf16>
    %c7 = arith.constant 7 : index
    %c0_25 = arith.constant 0 : index
    %c0_26 = arith.constant 0 : index
    %48 = vector.load %arg4[%c7, %c0_25, %c0_26] : memref<9x4x128xbf16, #tpu.memory_space<vmem>>, vector<1x4x128xbf16>
    %49 = vector.shape_cast %48 : vector<1x4x128xbf16> to vector<4x128xbf16>
    %cst_27 = arith.constant dense<0.000000e+00> : vector<64x128xf32>
    %50 = tpu.matmul %47, %49, %cst_27 {dimension_numbers = #tpu.dot_dimension_numbers<[1], [0], [0], [1], [0, 0, 1, 1], [], []>} : vector<64x4xbf16>, vector<4x128xbf16>, vector<64x128xf32> -> vector<64x128xf32>
    %51 = arith.addf %45, %50 : vector<64x128xf32>
    %52 = vector.extract_strided_slice %4 {offsets = [2, 2, 0], sizes = [4, 16, 4], strides = [1, 1, 1]} : vector<6x18x4xbf16> to vector<4x16x4xbf16>
    %53 = vector.shape_cast %52 : vector<4x16x4xbf16> to vector<64x4xbf16>
    %c8 = arith.constant 8 : index
    %c0_28 = arith.constant 0 : index
    %c0_29 = arith.constant 0 : index
    %54 = vector.load %arg4[%c8, %c0_28, %c0_29] : memref<9x4x128xbf16, #tpu.memory_space<vmem>>, vector<1x4x128xbf16>
    %55 = vector.shape_cast %54 : vector<1x4x128xbf16> to vector<4x128xbf16>
    %cst_30 = arith.constant dense<0.000000e+00> : vector<64x128xf32>
    %56 = tpu.matmul %53, %55, %cst_30 {dimension_numbers = #tpu.dot_dimension_numbers<[1], [0], [0], [1], [0, 0, 1, 1], [], []>} : vector<64x4xbf16>, vector<4x128xbf16>, vector<64x128xf32> -> vector<64x128xf32>
    %57 = arith.addf %51, %56 : vector<64x128xf32>
    %c0_31 = arith.constant 0 : index
    %c0_32 = arith.constant 0 : index
    %58 = vector.load %arg5[%c0_31, %c0_32] : memref<1x128xf32, #tpu.memory_space<vmem>>, vector<1x128xf32>
    %59 = vector.broadcast %58 : vector<1x128xf32> to vector<64x128xf32>
    %60 = arith.addf %57, %59 : vector<64x128xf32>
    %cst_33 = arith.constant 0.000000e+00 : f32
    %61 = vector.broadcast %cst_33 : f32 to vector<64x128xf32>
    %62 = arith.maximumf %60, %61 : vector<64x128xf32>
    %c0_34 = arith.constant 0 : index
    %c0_35 = arith.constant 0 : index
    %63 = vector.load %arg7[%c0_34, %c0_35] : memref<8x128xf32, #tpu.memory_space<vmem>>, vector<8x128xf32>
    %64 = vector.shape_cast %62 : vector<64x128xf32> to vector<8x8x128xf32>
    %cst_36 = arith.constant dense<0.000000e+00> : vector<8x128xf32>
    %65 = vector.multi_reduction <add>, %64, %cst_36 [0] : vector<8x8x128xf32> to vector<8x128xf32>
    %66 = arith.addf %63, %65 : vector<8x128xf32>
    %c0_37 = arith.constant 0 : index
    %c0_38 = arith.constant 0 : index
    %67 = vector.load %arg7[%c0_37, %c0_38] : memref<8x128xf32, #tpu.memory_space<vmem>>, vector<8x128xf32>
    tpu.vector_store %arg7[%c0_37, %c0_38], %66 {strides = array<i32>} : memref<8x128xf32, #tpu.memory_space<vmem>>, vector<8x128xf32>,
    %c3_i32 = arith.constant 3 : i32
    %68 = arith.cmpi eq, %arg2, %c3_i32 : i32
    %69 = arith.extui %68 : i1 to i32
    %c0_i32_39 = arith.constant 0 : i32
    %70 = arith.cmpi ne, %69, %c0_i32_39 : i32
    scf.if %70 {
      %c0_40 = arith.constant 0 : index
      %c0_41 = arith.constant 0 : index
      %71 = vector.load %arg7[%c0_40, %c0_41] : memref<8x128xf32, #tpu.memory_space<vmem>>, vector<8x128xf32>
      %cst_42 = arith.constant dense<0.000000e+00> : vector<128xf32>
      %72 = vector.multi_reduction <add>, %71, %cst_42 [0] : vector<8x128xf32> to vector<128xf32>
      %73 = vector.shape_cast %72 : vector<128xf32> to vector<1x128xf32>
      %cst_43 = arith.constant 3.906250e-03 : f32
      %74 = vector.broadcast %cst_43 : f32 to vector<1x128xf32>
      %75 = arith.mulf %73, %74 : vector<1x128xf32>
      %c0_44 = arith.constant 0 : index
      %c0_45 = arith.constant 0 : index
      %c0_46 = arith.constant 0 : index
      %76 = vector.load %arg6[%c0_44, %c0_45, %c0_46] : memref<1x1x128xf32, #tpu.memory_space<vmem>>, vector<1x1x128xf32>
      %77 = vector.shape_cast %76 : vector<1x1x128xf32> to vector<1x128xf32>
      %78 = vector.shape_cast %75 : vector<1x128xf32> to vector<1x1x128xf32>
      tpu.vector_store %arg6[%c0_44, %c0_45, %c0_46], %78 {strides = array<i32>} : memref<1x1x128xf32, #tpu.memory_space<vmem>>, vector<1x1x128xf32>,
    } else {
    }
    return
  }
  func.func @transform_0(%arg0: i32, %arg1: i32, %arg2: i32) -> (i32, i32, i32, i32) {
    %c4_i32 = arith.constant 4 : i32
    %0 = arith.muli %arg0, %c4_i32 : i32
    %1 = arith.addi %0, %arg2 : i32
    %c0_i32 = arith.constant 0 : i32
    %c0_i32_0 = arith.constant 0 : i32
    %c0_i32_1 = arith.constant 0 : i32
    %c0_i32_2 = arith.constant 0 : i32
    return %1, %c0_i32, %c0_i32_0, %c0_i32_1 : i32, i32, i32, i32
  }
  func.func @transform_1(%arg0: i32, %arg1: i32, %arg2: i32) -> (i32, i32, i32) {
    %c0_i32 = arith.constant 0 : i32
    %c0_i32_0 = arith.constant 0 : i32
    %c0_i32_1 = arith.constant 0 : i32
    return %c0_i32, %c0_i32_0, %arg1 : i32, i32, i32
  }
  func.func @transform_2(%arg0: i32, %arg1: i32, %arg2: i32) -> (i32, i32) {
    %c0_i32 = arith.constant 0 : i32
    %c0_i32_0 = arith.constant 0 : i32
    return %c0_i32, %arg1 : i32, i32
  }
  func.func @transform_3(%arg0: i32, %arg1: i32, %arg2: i32) -> (i32, i32, i32) {
    %c0_i32 = arith.constant 0 : i32
    %c0_i32_0 = arith.constant 0 : i32
    return %arg0, %c0_i32, %arg1 : i32, i32, i32
  }
}

</mosaic_0001>

<bundles_post_ra>
// kernel: tpu_custom_call.1
= control target key start
LH: loop header
LB: loop body
LE: loop exit
PB: predicated region body
PF: predicated region fallthrough
CT: control target
= control target key end

     0   :  { %s2530_s0 = inlined_call_operand.vmem [shape: bf16[8,6,18,4], index: 0, kind: input, shape index: {}]   ;;  %s2531_s1 = inlined_call_operand.vmem [shape: bf16[9,4,256], index: 1, kind: input, shape index: {}]   ;;  %s2532_s2 = inlined_call_operand.vmem [shape: f32[1,256], index: 2, kind: input, shape index: {}]   ;;  %s2533_s3 = inlined_call_operand.hbm [shape: f32[2,1,256], index: 3, kind: output, shape index: {}]  }
   0x1   :  { %2537 = sst [smem:[#allocation11_spill]] %s2531_s1 }
   0x2   :  { %8 = vsyncpa [#allocation5], 0 }
   0x3   :  { %10 = vsyncpa [#allocation5 + $0x1], 0  ;;  %s2060_s12 = smov 0   ;;  %s2062_s13 = smov 0  }
   0x4   :  { %s2064_s14 = smov 0   ;;  %s2066_s15 = smov 0  }
   0x5   :  { %s2068_s16 = smov 0   ;;  %s2070_s17 = smov 0  }
   0x6   :  { %s2072_s18 = smov 0   ;;  %s2074_s19 = smov 0  }
   0x7   :  { %s2076_s20 = smov 0   ;;  %s2078_s21 = smov 0  }
   0x8   :  { %s2080_s22 = smov 0   ;;  %s2082_s23 = smov 0  }
   0x9 LB: > { %2538 = sst [smem:[#allocation7_spill]] %s2032_s22  ;;  %s1501_s24 = sadd.s32 4294967295, %s2036_s23   ;;  %s2036_s23 = sphi %s2082_s23, %s16_s23   ;;  %s2032_s22 = sphi %s2080_s22, %s2553_s22   ;;  %s2028_s21 = sphi %s2078_s21, %s2562_s21   ;;  %s2024_s20 = sphi %s2076_s20, %s2561_s20   ;;  %s2020_s19 = sphi %s2074_s19, %s2550_s19   ;;  %s2016_s18 = sphi %s2072_s18, %s2560_s18   ;;  %s2012_s17 = sphi %s2070_s17, %s2559_s17   ;;  %s2008_s16 = sphi %s2068_s16, %s2558_s16   ;;  %s2004_s15 = sphi %s2066_s15, %s2557_s15   ;;  %s2000_s14 = sphi %s2064_s14, %s2556_s14   ;;  %s1996_s13 = sphi %s2062_s13, %s2555_s13   ;;  %s1992_s12 = sphi %s2060_s12, %s2554_s12  }
   0xa   : > { %s1502_s25 = sadd.s32 4294967294, %s2036_s23   ;;  %s28_s26 = sadd.s32 1, %s2024_s20 }
   0xb   : > { %p29_p0 = scmp.ge.s32.totalorder %s28_s26, 4  ;;  %s31_s27 = sadd.s32 1, %s2028_s21 }
   0xc   : > { %s35_s28 = sadd.s32 1, %s2032_s22  ;;  %p79_p1 = scmp.ne.s32.totalorder %s2008_s16, %s2004_s15 }
   0xd   : > { %s2564_s26 = smov (%p29_p0, %s28_s26), 0  ;;  %s2566_s27 = smov (!%p29_p0, %s31_s27), %s2028_s21 }
   0xe   : > { %2539 = sst [smem:[#allocation8_spill]] %s2564_s26  ;;  %s72_s29 = sadd.s32 1, %s2008_s16 }
   0xf   : > { %p80_p2 = scmp.eq.s32.totalorder %s2036_s23, 0  ;;  %p33_p3 = scmp.ge.s32.totalorder %s2566_s27, 2 }
  0x10   : > { %p136_p4 = scmp.ne.s32.totalorder %s2000_s14, %s1996_s13  ;;  %p137_p6 = scmp.eq.s32.totalorder %s1501_s24, 15 }
  0x11   : > { %p2134_p5 = por %p80_p2, %p79_p1  ;;  %s2568_s27 = smov (%p33_p3, %s2566_s27), 0 }
  0x12   : > { %2541 = sst [smem:[#allocation9_spill]] %s2568_s27  ;;  %s2570_s28 = smov (!%p33_p3, %s35_s28), %s2032_s22 }
  0x13   : > { %s69_s4 = ssub.s32 %s2028_s21, %s2568_s27  ;;  %p2143_p7 = por %p137_p6, %p136_p4 }
  0x14   : > { %p37_p8 = scmp.ge.s32.totalorder %s2570_s28, 2  ;;  %p70_p9 = scmp.eq.s32.totalorder %s69_s4, 0 }
  0x15   : > { %p142_p10 = scmp.ne.s32.totalorder %s1996_s13, %s1992_s12  ;;  %p143_p11 = scmp.eq.s32.totalorder %s1502_s25, 15 }
  0x16   : > { %s2572_s28 = smov (%p37_p8, %s2570_s28), 0  ;;  %s126_s10 = sadd.s32 1, %s2000_s14 }
  0x17   : > { %2543 = sst [smem:[#allocation10_spill]] %s2572_s28  ;;  %s121_s7 = ssub.s32 %s2032_s22, %s2572_s28 }
  0x18   : > { %s2152_s6 = scalar_select %p70_p9, %s2008_s16, %s72_s29  }
  0x19   : > { %p2156_p12 = por %p143_p11, %p142_p10  ;;  %s123_s9 = sor.u32 %s121_s7, %s69_s4 }
  0x1a   : > { %p124_p13 = scmp.eq.s32.totalorder %s123_s9, 0  ;;  %p1506_p0 = scmp.ge.s32.totalorder %s2036_s23, 16 }
  0x1c   : > { %s2162_s11 = scalar_select %p124_p13, %s2000_s14, %s126_s10  }
  0x1d   : > { %159 = sbr.rel (%p1506_p0) target bundleno = 52 (0x34), region = 16 }
  0x24   : > { %174 = sbr.rel (!%p2134_p5) target bundleno = 52 (0x34), region = 24  ;;  %s176_s24 = sand.u32 (%p2134_p5), 1, %s2008_s16  }
  0x25   : > { %s1507_s25 = sshll.u32 (%p2134_p5), %s2028_s21, 1  ;;  %s1797_s29 = smul.u32 (%p2134_p5), 18, %s176_s24 }
  0x26   : > { %s2545_s1 = sld [smem:[#allocation11_spill]] (%p2134_p5) }
  0x27   : > { %s178_s4 = scalar_lea.vmem (%p2134_p5), [#allocation3], %s1797_s29 }
  0x2c   : > { %s180_s26 = scalar_lea.vmem %s2545_s1, %s1507_s25 }
  0x2d   : > { %v196_v0 = vld [vmem:[%s180_s26] sm:$0x3]  ;;  %v198_v1 = vld [vmem:[%s180_s26 + $0x4] sm:$0x3]  ;;  %v200_v2 = vld [vmem:[%s180_s26 + $0x8] sm:$0x3] }
  0x2e   : > { %v202_v3 = vld [vmem:[%s180_s26 + $0xc] sm:$0x3]  ;;  %v204_v4 = vld [vmem:[%s180_s26 + $0x10] sm:$0x3]  ;;  %197 = vst [vmem:[%s178_s4] sm:$0x3] %v196_v0 }
  0x2f   : > { %199 = vst [vmem:[%s178_s4 + $0x2] sm:$0x3] %v198_v1  ;;  %201 = vst [vmem:[%s178_s4 + $0x4] sm:$0x3] %v200_v2  ;;  %v206_v5 = vld [vmem:[%s180_s26 + $0x14] sm:$0x3] }
  0x30   : > { %203 = vst [vmem:[%s178_s4 + $0x6] sm:$0x3] %v202_v3  ;;  %205 = vst [vmem:[%s178_s4 + $0x8] sm:$0x3] %v204_v4  ;;  %v208_v6 = vld [vmem:[%s180_s26 + $0x18] sm:$0x3] }
  0x31   : > { %v210_v7 = vld [vmem:[%s180_s26 + $0x1c] sm:$0x3]  ;;  %207 = vst [vmem:[%s178_s4 + $0xa] sm:$0x3] %v206_v5  ;;  %209 = vst [vmem:[%s178_s4 + $0xc] sm:$0x3] %v208_v6 }
  0x32   : > { %211 = vst [vmem:[%s178_s4 + $0xe] sm:$0x3] %v210_v7  ;;  %v212_v8 = vld [vmem:[%s180_s26 + $0x20] sm:$0x3] }
  0x33   : > { %213 = vst [vmem:[%s178_s4 + $0x10] sm:$0x3] %v212_v8 }
  0x34 PF: > { %p1508_p1 = scmp.ge.s32.totalorder %s2036_s23, 1  ;;  %p259_p2 = scmp.lt.s32.totalorder %s2036_s23, 17 }
  0x36   : > { %p260_p3 = pnand %p1508_p1, %p259_p2 }
  0x37   : > { %s266_s27 = sand.u32 (!%p260_p3), 1, %s2004_s15   ;;  %s296_s28 = sand.u32 (!%p260_p3), 1, %s1996_s13  }
  0x38   : > { %263 = sbr.rel (%p260_p3) target bundleno = 440 (0x1b8), region = 69  ;;  %s1509_s26 = sshll.u32 (!%p260_p3), %s2020_s19, 2 }
  0x39   : > { %s1798_s30 = smul.u32 (!%p260_p3), 18, %s266_s27  ;;  %p307_p4 = scmp.lt.s32.totalorder (!%p260_p3), %s2016_s18, 1 }
  0x3a   : > { %s299_s7 = sadd.s32 (!%p260_p3), %s2012_s17, %s1509_s26  ;;  %s2195_s27 = scalar_lea.vmem (!%p260_p3), [#allocation4], %s296_s28 }
  0x3b   : > { %p300_p5 = scmp.lt.s32.totalorder (!%p260_p3), %s299_s7, 7  ;;  %s2191_s15 = scalar_lea.vmem (!%p260_p3), [#allocation3], %s1798_s30 }
  0x3c   : > { %p1511_p6 = scmp.ne.s32.totalorder (!%p260_p3), %s2012_s17, 0 }
  0x3f   : > { %s2180_s9 = scalar_select %p307_p4, %s2016_s18, 1 }
  0x40   : > { %s2574_s7 = smov (!%p300_p5, %s299_s7), 7  ;;  %314 = sbr.rel (%p1511_p6) target bundleno = 71 (0x47), region = 77 }
  0x41   : > { %s309_s25 = scalar_lea.vmem %s2532_s2, %s2180_s9  ;;  %s1799_s29 = smul.u32 72, %s2574_s7  ;;  %v2038_v9 = vmov (!%p1511_p6), 0.0  }
  0x42   : > { %315 = vst [vmem:[#allocation2] sm:$0xff] (!%p1511_p6), %v2038_v9 }
  0x43   : > { %s2189_s22 = scalar_lea.vmem %s2530_s0, %s1799_s29 }
  0x47 PF: > { %v1512_v10 = vld [vmem:[%s2191_s15 + $0x2] sm:$0x3]  ;;  %vm461_vm0 = vcmask 1041408   ;;  %v2200_v11 = vld [vmem:[%s2191_s15 + $0x8] sm:$0x3]  ;;  %vm448_vm4 = vcmask 31744  }
  0x48   : > { %1787 = vmatprep.subr.msk.bf16.mxu1 %vm461_vm0, %v1512_v10  ;;  %1791 = vmatprep.subr.msk.bf16.mxu0 %vm461_vm0, %v2200_v11  ;;  %v463_v12 = vsel %vm461_vm0, %v1512_v10, 0  ;;  %v2208_v13 = vsel %vm461_vm0, %v2200_v11, 0  ;;  %v2211_v14 = vld [vmem:[%s2189_s22] sm:$0xf]  ;;  %v2214_v15 = vld [vmem:[%s2189_s22 + $0x4] sm:$0xf] }
  0x49   : > { %1632 = vmatpush3.bf16.msra.mxu1 %v463_v12  ;;  %1672 = vmatpush3.bf16.msra.mxu0 %v2208_v13  ;;  %v2218_v16 = vld [vmem:[%s2189_s22 + $0x8] sm:$0x1]  ;;  %vm335_vm1 = vsmask.f32 3328  ;;  %vm336_vm2 = vsmask.f32 7440 }
  0x4a   : > { %v339_v17 = vshrl.u32 %v2211_v14, 16  ;;  %v342_v18 = vshll.u32 %v2211_v14, 16  ;;  %v348_v19 = vshll.u32 %v2214_v15, 16  ;;  %v352_v20 = vshrl.u32 %v2214_v15, 16  ;;  %v334_v21 = vld [vmem:[%s2191_s15] sm:$0x3]  ;;  %vm2248_vm3 = vmor %vm335_vm1, %vm336_vm2 }
  0x4b   : > { %v358_v22 = vshll.u32 %v2218_v16, 16  ;;  %1788 = vmatprep.subr.msk.bf16.mxu1 %vm461_vm0, %v334_v21  ;;  %v2228_v23 = vld [vmem:[%s2189_s22 + $0xc] sm:$0xf]  ;;  %v2231_v24 = vld [vmem:[%s2189_s22 + $0x10] sm:$0xf]  ;;  %v563_v4 = vsel %vm461_vm0, %v334_v21, 0 }
  0x4c   : > { %v341_v25 = vrot.slane %v339_v17, 4  ;;  %v344_v26 = vrot.slane %v342_v18, 5  ;;  %v350_v27 = vrot.slane %v348_v19, 5  ;;  %v354_v28 = vrot.slane %v352_v20, 4  ;;  %v2234_v29 = vld [vmem:[%s2189_s22 + $0x14] sm:$0x1] }
  0x4d   : > { %v360_v30 = vrot.slane %v358_v22, 5  ;;  %v363_v31 = vshrl.u32 %v2228_v23, 16  ;;  %v366_v32 = vshll.u32 %v2228_v23, 16  ;;  %v372_v33 = vshll.u32 %v2231_v24, 16  ;;  %v1555_v34 = vld [vmem:[%s2191_s15 + $0xa] sm:$0x3] }
  0x4e   : > { %v345_v35 = vor.u32 %v344_v26, %v341_v25  ;;  %v355_v36 = vor.u32 %v354_v28, %v350_v27  ;;  %v376_v37 = vshrl.u32 %v2231_v24, 16  ;;  %v382_v38 = vshll.u32 %v2234_v29, 16  ;;  %1793 = vmatprep.subr.msk.bf16.mxu0 %vm461_vm0, %v1555_v34  ;;  %v2244_v39 = vld [vmem:[%s2189_s22 + $0x18] sm:$0xf]  ;;  %v2253_v47 = vld [vmem:[%s2189_s22 + $0x1c] sm:$0xf] }
  0x4f   : > { %v365_v41 = vrot.slane %v363_v31, 4  ;;  %v368_v42 = vrot.slane %v366_v32, 5  ;;  %v374_v43 = vrot.slane %v372_v33, 5  ;;  %v2256_v50 = vld [vmem:[%s2189_s22 + $0x20] sm:$0x1]  ;;  %v387_v51 = vshrl.u32 %v2244_v39, 16 }
  0x50   : > { %v346_v44 = vrot.slane %v345_v35, 4  ;;  %v356_v45 = vrot.slane %v355_v36, 4  ;;  %v378_v46 = vrot.slane %v376_v37, 4  ;;  %v384_v49 = vrot.slane %v382_v38, 5  ;;  %v2266_v60 = vld [vmem:[%s2189_s22 + $0x24] sm:$0xf] }
  0x51   : > { %v369_v48 = vor.u32 %v368_v42, %v365_v41  ;;  %v390_v55 = vshll.u32 %v2244_v39, 16  ;;  %v389_v58 = vrot.slane %v387_v51, 4  ;;  %v396_v59 = vshll.u32 %v2253_v47, 16  ;;  %v2271_v1 = vld [vmem:[%s2189_s22 + $0x28] sm:$0xf]  ;;  %p1581_p8 = scmp.ne.s32.totalorder %s2012_s17, 3 }
  0x52   : > { %v351_v52 = vsel %vm2248_vm3, %v346_v44, %v350_v27  ;;  %v361_v53 = vsel %vm2248_vm3, %v356_v45, %v360_v30  ;;  %v379_v54 = vor.u32 %v378_v46, %v374_v43  ;;  %v400_v63 = vshrl.u32 %v2253_v47, 16  ;;  %v2279_v6 = vld [vmem:[%s2189_s22 + $0x2c] sm:$0x1]  ;;  %v1561_v51 = vld [vmem:[%s2191_s15 + $0xc] sm:$0x3] }
  0x53   : > { %v1513_v56 = vcombine.low %v351_v52, %v361_v53  ;;  %v370_v57 = vrot.slane %v369_v48, 4  ;;  %v392_v62 = vrot.slane %v390_v55, 5  ;;  %v406_v0 = vshll.u32 %v2256_v50, 16  ;;  %v1533_v26 = vld [vmem:[%s2191_s15 + $0x4] sm:$0x3] }
  0x54   : > { %v380_v61 = vrot.slane %v379_v54, 4  ;;  %v649_v3 = vrot.slane %v2234_v29, 5  ;;  %v398_v5 = vrot.slane %v396_v59, 5  ;;  %v402_v9 = vrot.slane %v400_v63, 4 }
  0x55   : > { %1633 = vmatprep.mubr.msk.bf16.mxu1 %vm448_vm4, %v1513_v56  ;;  %v375_v2 = vsel %vm2248_vm3, %v370_v57, %v374_v43  ;;  %v393_v8 = vor.u32 %v392_v62, %v389_v58  ;;  %v408_v10 = vrot.slane %v406_v0, 5  ;;  %v411_v17 = vshrl.u32 %v2266_v60, 16  ;;  %v329_v62 = vld [vmem:[%s2189_s22 + $0x34] sm:$0xf] }
  0x56   : > { %v385_v7 = vsel %vm2248_vm3, %v380_v61, %v384_v49  ;;  %v414_v18 = vshll.u32 %v2266_v60, 16  ;;  %v420_v19 = vshll.u32 %v2271_v1, 16  ;;  %v403_v22 = vor.u32 %v402_v9, %v398_v5 }
  0x57   : > { %v1514_v12 = vcombine.low %v375_v2, %v385_v7  ;;  %v394_v20 = vrot.slane %v393_v8, 4  ;;  %v424_v21 = vshrl.u32 %v2271_v1, 16  ;;  %v430_v25 = vshll.u32 %v2279_v6, 16  ;;  %v328_v7 = vld [vmem:[%s2189_s22 + $0x30] sm:$0xf] }
  0x58   : > { %v413_v27 = vrot.slane %v411_v17, 4  ;;  %v416_v28 = vrot.slane %v414_v18, 5  ;;  %v422_v29 = vrot.slane %v420_v19, 5  ;;  %vm634_vm5 = vcmask 1042432   ;;  %v2343_v8 = vld [vmem:[%s2189_s22 + $0x38] sm:$0x1] }
  0x59   : > { %1673 = vmatprep.mubr.msk.bf16.mxu0 %vm448_vm4, %v1514_v12  ;;  %1634 = vmatmul.mubr.msk.bf16.vlgmr.msra.gmra.mrb[0].mxu1 %vm448_vm4, %v1514_v12  ;;  %v399_v30 = vsel %vm2248_vm3, %v394_v20, %v398_v5  ;;  %v404_v31 = vrot.slane %v403_v22, 4  ;;  %v978_v32 = vsel %vm461_vm0, %v1555_v34, 0  ;;  %v426_v33 = vrot.slane %v424_v21, 4 }
  0x5a   : > { %1642 = vmatpush3.bf16.msra.mxu1 %v563_v4  ;;  %v417_v35 = vor.u32 %v416_v28, %v413_v27  ;;  %vm635_vm6 = vcmask 1046532   ;;  %v1530_v36 = vrot.slane %v2228_v23, 9  ;;  %v646_v37 = vrot.slane %v2231_v24, 5 }
  0x5b   : > { %1789 = vmatprep.subr.msk.bf16.mxu1 %vm461_vm0, %v1533_v26  ;;  %v409_v38 = vsel %vm2248_vm3, %v404_v31, %v408_v10  ;;  %v427_v41 = vor.u32 %v426_v33, %v422_v29  ;;  %v432_v42 = vrot.slane %v430_v25, 5  ;;  %vm2299_vm7 = vmor %vm634_vm5, %vm635_vm6  ;;  %v653_v34 = vrot.slane %v2253_v47, 5 }
  0x5c   : > { %v2304_v44 = vcombine.low %v399_v30, %v409_v38  ;;  %v418_v45 = vrot.slane %v417_v35, 4  ;;  %v647_v46 = vsel %vm2299_vm7, %v1530_v36, %v646_v37  ;;  %v648_v48 = vrot.slane %v646_v37, 4 }
  0x5d   : > { %v428_v49 = vrot.slane %v427_v41, 4  ;;  %v1521_v52 = vcombine.low %v2211_v14, %v2214_v15  ;;  %v656_v53 = vrot.slane %v2256_v50, 5  ;;  %v1531_v56 = vrot.slane %v2244_v39, 9 }
  0x5e   : > { %1674 = vmatmul.mubr.msk.bf16.vlgmr.msra.gmra.mrb[0].mxu0 %vm448_vm4, %v2304_v44  ;;  %1637 = vmatprep.mubr.msk.bf16.mxu1 %vm448_vm4, %v2304_v44  ;;  %v423_v54 = vsel %vm2248_vm3, %v418_v45, %v422_v29  ;;  %v650_v55 = vsel %vm2299_vm7, %v648_v48, %v649_v3  ;;  %v655_v58 = vrot.slane %v653_v34, 4  ;;  %v660_v59 = vrot.slane %v2271_v1, 5  ;;  %v331_v45 = vld [vmem:[%s2189_s22 + $0x3c] sm:$0xf]  ;;  %v1574_v48 = vld [vmem:[%s2191_s15 + $0x10] sm:$0x3] }
  0x5f   : > { %1682 = vmatpush3.bf16.msra.mxu0 %v978_v32  ;;  %v433_v57 = vsel %vm2248_vm3, %v428_v49, %v432_v42  ;;  %v2323_v50 = vcombine.low %v647_v46, %v650_v55  ;;  %v1532_v63 = vrot.slane %v2266_v60, 9  ;;  %v663_v2 = vrot.slane %v2279_v6, 5  ;;  %v332_v46 = vld [vmem:[%s2189_s22 + $0x40] sm:$0xf] }
  0x60   : > { %v2326_v61 = vcombine.low %v423_v54, %v433_v57  ;;  %1794 = vmatprep.subr.msk.bf16.mxu0 %vm461_vm0, %v1561_v51  ;;  %v662_v0 = vrot.slane %v660_v59, 4  ;;  %v654_v3 = vsel %vm2299_vm7, %v1531_v56, %v653_v34  ;;  %v657_v4 = vsel %vm2299_vm7, %v655_v58, %v656_v53 }
  0x61   : > { %1683 = vmatprep.mubr.msk.bf16.mxu0 %vm448_vm4, %v2323_v50  ;;  %v964_v5 = vrot.slane %v329_v62, 5  ;;  %v639_v9 = vrot.slane %v2214_v15, 5  ;;  %v661_v6 = vsel %vm2299_vm7, %v1532_v63, %v660_v59  ;;  %v642_v12 = vrot.slane %v2218_v16, 5  ;;  %v333_v63 = vld [vmem:[%s2189_s22 + $0x44] sm:$0x1] }
  0x62   : > { %1638 = vmatmul.mubr.msk.bf16.gmra.mrb[4].mxu1 %vm448_vm4, %v2326_v61  ;;  %v664_v10 = vsel %vm2299_vm7, %v662_v0, %v663_v2  ;;  %v2353_v17 = vcombine.low %v2228_v23, %v2231_v24  ;;  %v2355_v18 = vcombine.low %v654_v3, %v657_v4  ;;  %v1064_v19 = vsel %vm461_vm0, %v1561_v51, 0  ;;  %v1567_v24 = vld [vmem:[%s2191_s15 + $0xe] sm:$0x3] }
  0x63   : > { %1643 = vmatprep.mubr.msk.bf16.mxu1 %vm448_vm4, %v1521_v52  ;;  %v692_v15 = vsel %vm461_vm0, %v1533_v26, 0  ;;  %v1554_v20 = vrot.slane %v328_v7, 9  ;;  %v966_v22 = vrot.slane %v964_v5, 4  ;;  %v967_v21 = vrot.slane %v2343_v8, 5  ;;  %v1542_v26 = vld [vmem:[%s2191_s15 + $0x6] sm:$0x3] }
  0x64   : > { %v2360_v25 = vcombine.low %v661_v6, %v664_v10  ;;  %v2364_v27 = vcombine.low %v2244_v39, %v2253_v47  ;;  %v1529_v16 = vrot.slane %v2211_v14, 9  ;;  %v641_v23 = vrot.slane %v639_v9, 4 }
  0x65   : > { %v965_v28 = vsel %vm2299_vm7, %v1554_v20, %v964_v5  ;;  %v968_v39 = vsel %vm2299_vm7, %v966_v22, %v967_v21  ;;  %v2391_v30 = vcombine.low %v2266_v60, %v2271_v1  ;;  %v854_v32 = vshrl.u32 %v328_v7, 16 }
  0x66   : > { %v640_v14 = vsel %vm2299_vm7, %v1529_v16, %v639_v9  ;;  %v643_v47 = vsel %vm2299_vm7, %v641_v23, %v642_v12  ;;  %v2387_v29 = vcombine.low %v965_v28, %v968_v39  ;;  %v857_v33 = vshll.u32 %v328_v7, 16  ;;  %v1580_v28 = vld [vmem:[%s309_s25] ss:$0 sm:$0xff] }
  0x67   : > { %v1534_v31 = vcombine.low %v640_v14, %v643_v47  ;;  %v863_v35 = vshll.u32 %v329_v62, 16  ;;  %v867_v60 = vshrl.u32 %v329_v62, 16  ;;  %v1172_v1 = vsel %vm461_vm0, %v1567_v24, 0 }
  0x68   : > { %v778_v36 = vsel %vm461_vm0, %v1542_v26, 0  ;;  %v1543_v37 = vcombine.low %v328_v7, %v329_v62  ;;  %v856_v38 = vrot.slane %v854_v32, 4  ;;  %v859_v41 = vrot.slane %v857_v33, 5 }
  0x69   : > { %v865_v42 = vrot.slane %v863_v35, 5  ;;  %v869_v34 = vrot.slane %v867_v60, 4  ;;  %v1140_v49 = vshrl.u32 %v331_v45, 16  ;;  %v1143_v51 = vshll.u32 %v331_v45, 16 }
  0x6a   : > { %1684 = vmatmul.mubr.msk.bf16.vlgmr.msra.gmra.mrb[0].mxu0 %vm448_vm4, %v2355_v18  ;;  %1644 = vmatmul.mubr.msk.bf16.vlgmr.msra.gmra.mrb[0].mxu1 %vm448_vm4, %v2353_v17  ;;  %v1153_v52 = vshrl.u32 %v332_v46, 16  ;;  %v1149_v53 = vshll.u32 %v332_v46, 16  ;;  %v860_v54 = vor.u32 %v859_v41, %v856_v38  ;;  %v873_v56 = vshll.u32 %v2343_v8, 16 }
  0x6b   : > { %1692 = vmatpush3.bf16.msra.mxu0 %v1064_v19  ;;  %1652 = vmatpush3.bf16.msra.mxu1 %v692_v15  ;;  %v870_v55 = vor.u32 %v869_v34, %v865_v42  ;;  %v1562_v57 = vcombine.low %v331_v45, %v332_v46  ;;  %v1145_v58 = vrot.slane %v1143_v51, 5  ;;  %v1159_v5 = vshll.u32 %v333_v63, 16 }
  0x6c   : > { %1687 = vmatprep.mubr.msk.bf16.mxu0 %vm448_vm4, %v2360_v25  ;;  %1647 = vmatprep.mubr.msk.bf16.mxu1 %vm448_vm4, %v2364_v27  ;;  %v1151_v59 = vrot.slane %v1149_v53, 5  ;;  %v1155_v62 = vrot.slane %v1153_v52, 4  ;;  %v861_v0 = vrot.slane %v860_v54, 4  ;;  %v875_v3 = vrot.slane %v873_v56, 5 }
  0x6d   : > { %1795 = vmatprep.subr.msk.bf16.mxu0 %vm461_vm0, %v1567_v24  ;;  %1790 = vmatprep.subr.msk.bf16.mxu1 %vm461_vm0, %v1542_v26  ;;  %v871_v2 = vrot.slane %v870_v55, 4  ;;  %v1161_v10 = vrot.slane %v1159_v5, 5  ;;  %v1264_v12 = vsel %vm461_vm0, %v1574_v48, 0  ;;  %v1573_v20 = vrot.slane %v331_v45, 9 }
  0x6e   : > { %v1156_v4 = vor.u32 %v1155_v62, %v1151_v59  ;;  %v866_v7 = vsel %vm2248_vm3, %v861_v0, %v865_v42  ;;  %v1253_v22 = vrot.slane %v333_v63, 5 }
  0x6f   : > { %v876_v8 = vsel %vm2248_vm3, %v871_v2, %v875_v3 }
  0x70   : > { %v1157_v6 = vrot.slane %v1156_v4, 4  ;;  %v1549_v19 = vcombine.low %v866_v7, %v876_v8  ;;  %v1362_v7 = vld [vmem:[#allocation2] sm:$0xff] }
  0x72   : > { %1688 = vmatmul.mubr.msk.bf16.gmra.mrb[4].mxu0 %vm448_vm4, %v2387_v29  ;;  %1648 = vmatmul.mubr.msk.bf16.gmra.mrb[4].mxu1 %vm448_vm4, %v2391_v30 }
  0x73   : > { %1693 = vmatprep.mubr.msk.bf16.mxu0 %vm448_vm4, %v2364_v27  ;;  %1653 = vmatprep.mubr.msk.bf16.mxu1 %vm448_vm4, %v1534_v31 }
  0x7a   : > { %1694 = vmatmul.mubr.msk.bf16.vlgmr.msra.gmra.mrb[0].mxu0 %vm448_vm4, %v2391_v30  ;;  %1654 = vmatmul.mubr.msk.bf16.vlgmr.msra.gmra.mrb[0].mxu1 %vm448_vm4, %v2323_v50  ;;  %v1142_v50 = vrot.slane %v1140_v49, 4 }
  0x7b   : > { %1702 = vmatpush3.bf16.msra.mxu0 %v1172_v1  ;;  %1662 = vmatpush3.bf16.msra.mxu1 %v778_v36 }
  0x7c   : > { %1697 = vmatprep.mubr.msk.bf16.mxu0 %vm448_vm4, %v1543_v37  ;;  %1657 = vmatprep.mubr.msk.bf16.mxu1 %vm448_vm4, %v2355_v18 }
  0x7d   : > { %1796 = vmatprep.subr.msk.bf16.mxu0 %vm461_vm0, %v1574_v48  ;;  %1792 = vmatprep.subr.msk.bf16.mxu1 %vm461_vm0, %v2200_v11  ;;  %v1146_v11 = vor.u32 %v1145_v58, %v1142_v50 }
  0x7f   : > { %v1147_v9 = vrot.slane %v1146_v11, 4 }
  0x82   : > { %1698 = vmatmul.mubr.msk.bf16.gmra.mrb[4].mxu0 %vm448_vm4, %v1562_v57  ;;  %1658 = vmatmul.mubr.msk.bf16.gmra.mrb[4].mxu1 %vm448_vm4, %v2360_v25 }
  0x83   : > { %1703 = vmatprep.mubr.msk.bf16.mxu0 %vm448_vm4, %v2304_v44  ;;  %1663 = vmatprep.mubr.msk.bf16.mxu1 %vm448_vm4, %v2353_v17  ;;  %v1152_v44 = vsel %vm2248_vm3, %v1147_v9, %v1151_v59  ;;  %v1162_v17 = vsel %vm2248_vm3, %v1157_v6, %v1161_v10 }
  0x84   : > { %v1568_v15 = vcombine.low %v1152_v44, %v1162_v17 }
  0x8a   : > { %1704 = vmatmul.mubr.msk.bf16.vlgmr.msra.gmra.mrb[0].mxu0 %vm448_vm4, %v2326_v61  ;;  %1664 = vmatmul.mubr.msk.bf16.vlgmr.msra.gmra.mrb[0].mxu1 %vm448_vm4, %v2364_v27 }
  0x8b   : > { %1712 = vmatpush3.bf16.msra.mxu0 %v1264_v12  ;;  %1722 = vmatpush3.bf16.msra.mxu1 %v2208_v13  ;;  %v1250_v13 = vrot.slane %v332_v46, 5 }
  0x8c   : > { %1707 = vmatprep.mubr.msk.bf16.mxu0 %vm448_vm4, %v1549_v19  ;;  %1667 = vmatprep.mubr.msk.bf16.mxu1 %vm448_vm4, %v2391_v30 }
  0x8d   : > { %v1252_v40 = vrot.slane %v1250_v13, 4  ;;  %v1251_v21 = vsel %vm2299_vm7, %v1573_v20, %v1250_v13 }
  0x92   : > { %1708 = vmatmul.mubr.msk.bf16.gmra.mrb[4].mxu0 %vm448_vm4, %v1568_v15  ;;  %1668 = vmatmul.mubr.msk.bf16.gmra.mrb[4].mxu1 %vm448_vm4, %v1543_v37 }
  0x93   : > { %1713 = vmatprep.mubr.msk.bf16.mxu0 %vm448_vm4, %v2355_v18  ;;  %1677 = vmatprep.mubr.msk.bf16.mxu1 %vm448_vm4, %v2326_v61  ;;  %v1254_v18 = vsel %vm2299_vm7, %v1252_v40, %v1253_v22 }
  0x94   : > { %v1575_v61 = vcombine.low %v1251_v21, %v1254_v18 }
  0x9a   : > { %1714 = vmatmul.mubr.msk.bf16.vlgmr.msra.gmra.mrb[0].mxu0 %vm448_vm4, %v2360_v25 }
  0x9b   : > { %1717 = vmatprep.mubr.msk.bf16.mxu0 %vm448_vm4, %v2387_v29 }
  0x9e   : > { %1678 = vmatmul.mubr.msk.bf16.vlgmr.msra.gmra.mrb[4].mxu1 %vm448_vm4, %v1549_v19 }
  0xa2   : > { %1718 = vmatmul.mubr.msk.bf16.gmra.mrb[4].mxu0 %vm448_vm4, %v1575_v61 }
 0x15d   : > { %v1665_v27 = vpop.f32.mrb[0].mxu1 }
 0x15e   : > { %v814_v16 = vpop.f32.mrb[1].mxu1 }
 0x15f   : > { %v1666_v23 = vpop.f32.mrb[2].mxu1 }
 0x160   : > { %v817_v24 = vpop.f32.mrb[3].mxu1 }
 0x16d   : > { %v1715_v26 = vpop.f32.mrb[0].mxu0 }
 0x16e   : > { %v1723_v25 = vadd.f32 %v1715_v26, %v1665_v27  ;;  %v1300_v39 = vpop.f32.mrb[1].mxu0 }
 0x16f   : > { %v1724_v14 = vadd.f32 %v1300_v39, %v814_v16  ;;  %v1716_v43 = vpop.f32.mrb[2].mxu0 }
 0x170   : > { %v1725_v47 = vadd.f32 %v1716_v43, %v1666_v23  ;;  %v1303_v29 = vpop.f32.mrb[3].mxu0  ;;  %v1348_v35 = vadd.f32 %v1723_v25, %v1580_v28 }
 0x171   : > { %v1346_v30 = vadd.f32 %v1724_v14, %v1580_v28  ;;  %v1726_v31 = vadd.f32 %v1303_v29, %v817_v24  ;;  %v1679_v32 = vpop.f32.mrb[4].mxu1 }
 0x172   : > { %v938_v33 = vpop.f32.mrb[5].mxu1  ;;  %v1349_v38 = vadd.f32 %v1725_v47, %v1580_v28  ;;  %v1356_v46 = vmax.f32 %v1348_v35, 0.0 }
 0x173   : > { %v1347_v60 = vadd.f32 %v1726_v31, %v1580_v28  ;;  %v1680_v1 = vpop.f32.mrb[6].mxu1  ;;  %v1354_v37 = vmax.f32 %v1346_v30, 0.0 }
 0x174   : > { %v941_v36 = vpop.f32.mrb[7].mxu1  ;;  %v1357_v54 = vmax.f32 %v1349_v38, 0.0 }
 0x175   : > { %v1355_v41 = vmax.f32 %v1347_v60, 0.0  ;;  %v1719_v42 = vpop.f32.mrb[4].mxu0 }
 0x176   : > { %v1727_v34 = vadd.f32 %v1719_v42, %v1679_v32  ;;  %v1316_v45 = vpop.f32.mrb[5].mxu0 }
 0x177   : > { %v1363_v48 = vadd.f32 %v1355_v41, %v1354_v37  ;;  %v1728_v49 = vadd.f32 %v1316_v45, %v938_v33  ;;  %v1720_v51 = vpop.f32.mrb[6].mxu0 }
 0x178   : > { %v1729_v52 = vadd.f32 %v1720_v51, %v1680_v1  ;;  %v1319_v53 = vpop.f32.mrb[7].mxu0  ;;  %v1352_v50 = vadd.f32 %v1727_v34, %v1580_v28 }
 0x179   : > { %v1364_v55 = vadd.f32 %v1363_v48, %v1356_v46  ;;  %v1350_v56 = vadd.f32 %v1728_v49, %v1580_v28  ;;  %v1730_v57 = vadd.f32 %v1319_v53, %v941_v36 }
 0x17a   : > { %v1353_v0 = vadd.f32 %v1729_v52, %v1580_v28  ;;  %v1360_v3 = vmax.f32 %v1352_v50, 0.0 }
 0x17b   : > { %v1358_v58 = vmax.f32 %v1350_v56, 0.0  ;;  %v1365_v59 = vadd.f32 %v1364_v55, %v1357_v54  ;;  %v1351_v62 = vadd.f32 %v1730_v57, %v1580_v28 }
 0x17c   : > { %v1361_v4 = vmax.f32 %v1353_v0, 0.0 }
 0x17d   : > { %v1366_v63 = vadd.f32 %v1365_v59, %v1358_v58  ;;  %v1359_v2 = vmax.f32 %v1351_v62, 0.0 }
 0x17f   : > { %v1367_v11 = vadd.f32 %v1366_v63, %v1359_v2 }
 0x181   : > { %v1368_v5 = vadd.f32 %v1367_v11, %v1360_v3  ;;  %1375 = sbr.rel (%p1581_p8) target bundleno = 414 (0x19e), region = 81 }
 0x183   : > { %v1369_v8 = vadd.f32 %v1368_v5, %v1361_v4 }
 0x185   : > { %v1370_v9 = vadd.f32 %v1369_v8, %v1362_v7 }
 0x187   : > { %1371 = vst [vmem:[#allocation2] sm:$0xff] %v1370_v9 }
 0x18e   : > { %v1376_v6 = vld [vmem:[#allocation2] sm:$0xff] }
 0x18f   : > { %v1377_v10 = vrot.slane %v1376_v6, 4 }
 0x191   : > { %v1378_v12 = vadd.f32 %v1377_v10, %v1376_v6 }
 0x193   : > { %v1379_v19 = vrot.slane %v1378_v12, 2 }
 0x195   : > { %v1380_v44 = vadd.f32 %v1379_v19, %v1378_v12 }
 0x197   : > { %v1381_v17 = vrot.slane %v1380_v44, 1 }
 0x199   : > { %v1382_v15 = vadd.f32 %v1381_v17, %v1380_v44 }
 0x19b   : > { %v1383_v13 = vmul.f32 0.00390625, %v1382_v15 }
 0x19d   : > { %1384 = vst [vmem:[%s2195_s27] sm:$0x1] %v1383_v13 }
 0x19e PF: > { %s1582_s30 = sshll.u32 %s2020_s19, 1  ;;  %s1400_s17 = sshll.u32 %s2195_s27, 4  ;;  %s2467_s17 = int_to_ptr.vmem [resolvable:$true] %s1400_s17 }
 0x19f   : > { %s1396_s26 = sadd.s32 %s2016_s18, %s1582_s30  ;;  %s1386_s25 = scalar_lea.sflag [#allocation5], %s296_s28 }
 0x1a0   : > { %s1583_s7 = sshll.u32 %s1396_s26, 4  ;;  %s1910_s29 = scalar_lea.vmem %s2467_s17, 16 }
 0x1a1   : > { %s1398_s24 = scalar_lea.hbm %s2533_s3, %s1583_s7  ;;  %p1911_p9 = scmp.ne.s32.totalorder %s2467_s17, %s1910_s29 }
 0x1a2   : > { %s2039_s19 = smov [#allocation4]  }
 0x1a3   : > { %p1912_p10 = pnand %p1911_p9, %p2143_p7  ;;  %s1914_s18 = sshll.u32 %s2039_s19, 4  ;;  %s1915_s18 = int_to_ptr.vmem [resolvable:$false] %s1914_s18 }
 0x1a4   : > { %s1916_s4 = scalar_lea.vmem %s1915_s18, 32  ;;  %p1917_p13 = scmp.lt.s32.totalorder %s2467_s17, %s1915_s18 }
 0x1a5   : > { %p1913_p11 = pneg %p1912_p10  ;;  %p1918_p0 = scmp.lt.s32.totalorder %s1916_s4, %s1910_s29 }
 0x1a7   : > { %p1919_p1 = por %p1918_p0, %p1917_p13 }
 0x1a9   : > { %p1920_p2 = pnand %p1919_p1, %p1913_p11 }
 0x1ab   : > { %1923 = shalt.err (!%p1920_p2)
}
 0x1ac   : > { %s1924_s15 = scalar_lea.hbm %s1398_s24, 16  ;;  %s1928_s1 = scalar_lea.hbm %s2533_s3, 64 }
 0x1ad   : > { %p1925_p3 = scmp.ne.s32.totalorder %s1398_s24, %s1924_s15  ;;  %p1929_p6 = scmp.lt.u32.totalorder %s1398_s24, %s2533_s3 }
 0x1ae   : > { %p1930_p8 = scmp.lt.u32.totalorder %s1928_s1, %s1924_s15  ;;  %p1932_p10 = scmp.lt.u32.totalorder %s1924_s15, %s1398_s24 }
 0x1af   : > { %p1926_p4 = pnand %p1925_p3, %p2143_p7 }
 0x1b0   : > { %p1931_p9 = por %p1930_p8, %p1929_p6 }
 0x1b1   : > { %p1927_p5 = pneg %p1926_p4 }
 0x1b2   : > { %p1933_p13 = por %p1932_p10, %p1931_p9 }
 0x1b4   : > { %p1934_p11 = pnand %p1933_p13, %p1927_p5 }
 0x1b6   : > { %1937 = shalt.err (!%p1934_p11)
}
 0x1b7   : > { %1800 = dma.vmem_to_hbm [thread:$0]  (%p2143_p7), %s2467_s17, 16, %s1398_s24, %s1386_s25  }
 0x1b8 PF: > { %p1806_p0 = scmp.ge.s32.totalorder %s2036_s23, 2  ;;  %s1412_s26 = sand.u32 1, %s1992_s12  }
 0x1b9   : > { %s1413_s7 = scalar_lea.sflag [#allocation5], %s1412_s26 }
 0x1ba   : > { %p1803_p1 = pnand %p1806_p0, %p2156_p12 }
 0x1bc   : > { %1987 = dma.done.wait (!%p1803_p1), %s1413_s7, 16  }
 0x1bd   : > { %1989 = vsyncadd (!%p1803_p1), %s1413_s7, 4294967280  ;;  %s16_s23 = sadd.s32 1, %s2036_s23   ;;  %s2550_s19 = sld [smem:[#allocation7_spill]] }
 0x1be   : > { %p13_p2 = scmp.ge.s32.totalorder %s16_s23, 18   ;;  %s2551_s5 = sld [smem:[#allocation8_spill]] }
 0x1bf   : > { %s2552_s9 = sld [smem:[#allocation9_spill]]  ;;  %s2553_s22 = sld [smem:[#allocation10_spill]] }
 0x1c0   : > { %s2554_s12 = smov %s1996_s13  ;;  %s2555_s13 = smov %s2000_s14 }
 0x1c1   : > { %s2556_s14 = smov %s2162_s11  ;;  %s2557_s15 = smov %s2008_s16 }
 0x1c2   : > { %s2558_s16 = smov %s2152_s6  ;;  %s2559_s17 = smov %s2024_s20 }
 0x1c3   : > { %s2560_s18 = smov %s2028_s21  ;;  %15 = sbr.rel (!%p13_p2) target bundleno = 9 (0x9), region = 135 }
 0x1c4   : > { %s2561_s20 = smov %s2551_s5 }
 0x1c5   : > { %s2562_s21 = smov %s2552_s9 }
 0x1ca   :  { %1417 = vsyncpa [#allocation5], 1 }
 0x1cb   :  { %1419 = vsyncpa [#allocation5 + $0x1], 1 }

</bundles_post_ra>
